<compile_context>
chip_gen: v6e
topology: v6e:2x2x1
jax: 0.10.0
libtpu: 0.0.40
codegen_flags: <defaults>
</compile_context>

<pallas_src>
import math

import jax
import jax.numpy as jnp
from jax.experimental import pallas as pl
from jax.experimental.pallas import tpu as pltpu

_LANE = 128
_SUBLANE = 8


def _round_up(x, m):
    return ((x + m - 1) // m) * m


# ---------------------------------------------------------------------------
# Fused kernel: LSTM time scan + all LSD (Linear+ReLU) heads in one invocation.
# Gate order matches torch.nn.LSTM: [i, f, g, o].
# ---------------------------------------------------------------------------
def _make_fused_rnn_kernel(B, T, I, H, wih_off, whh_off, b_off, head_meta):
    """All sizes / packed-buffer row offsets are static Python ints.

    head_meta: tuple of (fan_in, fan_out, w_row_off, b_row_off) per LSD head.
    """
    G = 4 * H

    def kernel(x_ref, p_ref, out_ref):
        # -- static views into the single packed parameter buffer ----------------
        wih = p_ref[wih_off:wih_off + I, :G]            # (I, 4H)
        whh = p_ref[whh_off:whh_off + H, :G]            # (H, 4H), resident for scan
        b_lstm = p_ref[b_off:b_off + 1, :G]             # (1, 4H)

        # -- 1) hoisted, time-major input projection ------------------------------
        #    x_ref is (T*B, I) in time-major order, so gx[t*B:(t+1)*B] is one
        #    aligned (B, 4H) tile per step (zero-cost static slice, no gather).
        gx = (
            jnp.dot(x_ref[...], wih, preferred_element_type=jnp.float32)
            + b_lstm
        )                                               # (T*B, 4H)

        # -- 2) recurrence, fully unrolled (T is small & static) ------------------
        #    t == 0: h = c = 0 -> skip the h @ W_hh matmul and the zero products.
        g0 = gx[0:B, :]
        sig0 = jax.nn.sigmoid(g0)                       # one EUP push, whole vreg
        tnh0 = jnp.tanh(g0)                             # one EUP push, whole vreg
        c = sig0[:, 0:H] * tnh0[:, 2 * H:3 * H]         # c = i * g
        h = sig0[:, 3 * H:4 * H] * jnp.tanh(c)          # h = o * tanh(c)

        # TODO(synk): if the bundle shows Mosaic re-feeding W_hh to the MXU every
        # step, switch to pltpu.matmul_push_rhs / matmul_acc_lhs / matmul_pop to
        # keep the RHS resident across the scan.
        for t in range(1, T):                           # static unroll
            gates = gx[t * B:(t + 1) * B, :] + jnp.dot(
                h, whh, preferred_element_type=jnp.float32
            )
            sig = jax.nn.sigmoid(gates)                 # i, f, o in one EUP push
            tnh = jnp.tanh(gates)                       # g in one EUP push
            c = sig[:, H:2 * H] * c + sig[:, 0:H] * tnh[:, 2 * H:3 * H]
            h = sig[:, 3 * H:4 * H] * jnp.tanh(c)

        # -- 3) LSD heads fused in: Linear -> ReLU --------------------------------
        #    Dropout and Quant/DeQuant stubs are identity at inference; the module
        #    applies ReLU to every head including the final classifier.
        y = h
        for fan_in, fan_out, w_off, bb_off in head_meta:
            w = p_ref[w_off:w_off + fan_in, :fan_out]
            bb = p_ref[bb_off:bb_off + 1, :fan_out]
            y = jnp.maximum(
                jnp.dot(y, w, preferred_element_type=jnp.float32) + bb, 0.0
            )
        out_ref[...] = y.astype(out_ref.dtype)

    return kernel


# ---------------------------------------------------------------------------
# Pack every small parameter tensor into one lane-padded, sublane-aligned buffer.
# ---------------------------------------------------------------------------
def _pack_params(wih_t, whh_t, b_lstm, linears):
    widths = [wih_t.shape[1], whh_t.shape[1], b_lstm.shape[1]]
    for w_t, b_row in linears:
        widths.extend([w_t.shape[1], b_row.shape[1]])
    lane = _round_up(max(widths), _LANE)

    segments = []
    offsets = []
    cur = 0

    def add(arr):
        nonlocal cur
        r, c = arr.shape
        r_pad = _round_up(r, _SUBLANE)                  # keep every slice 8-aligned
        seg = jnp.zeros((r_pad, lane), jnp.float32).at[:r, :c].set(arr)
        segments.append(seg)
        offsets.append(cur)
        cur += r_pad

    add(wih_t)
    add(whh_t)
    add(b_lstm)
    head_meta = []
    for w_t, b_row in linears:
        add(w_t)
        w_off = offsets[-1]
        add(b_row)
        bb_off = offsets[-1]
        head_meta.append((int(w_t.shape[0]), int(w_t.shape[1]), w_off, bb_off))

    packed = jnp.concatenate(segments, axis=0)
    return packed, offsets[0], offsets[1], offsets[2], tuple(head_meta)


# ---------------------------------------------------------------------------
# Wrapper: pad batch, go time-major, one pallas_call.
# ---------------------------------------------------------------------------
def fused_rnn_forward(x_bti, packed, *, input_size, hidden_size,
                      wih_off, whh_off, b_off, head_meta):
    B, T, I = x_bti.shape
    H = hidden_size
    out_dim = head_meta[-1][1]

    # Pad batch to the f32 sublane tile so each per-step gates slice is one
    # fully-populated (8, 128) vreg; pad rows are sliced off after the kernel.
    B_pad = _round_up(max(B, _SUBLANE), _SUBLANE)
    if B_pad != B:
        x_bti = jnp.pad(x_bti, ((0, B_pad - B), (0, 0), (0, 0)))

    # Time-major layout (tiny XLA transpose in HBM, off the serial recurrence path).
    x2d = jnp.transpose(x_bti, (1, 0, 2)).reshape(T * B_pad, I)

    flops = (
        2 * T * B_pad * I * 4 * H                       # hoisted input projection
        + 2 * (T - 1) * B_pad * H * 4 * H               # recurrent matmuls
        + sum(2 * B_pad * fi * fo for fi, fo, _, _ in head_meta)
    )
    transcendentals = T * B_pad * (2 * 4 * H + H)       # sigmoid+tanh(gates), tanh(c)
    bytes_accessed = (x2d.size + packed.size + B_pad * out_dim) * 4

    kernel = _make_fused_rnn_kernel(
        B_pad, T, I, H, wih_off, whh_off, b_off, head_meta
    )

    vmem = pltpu.MemorySpace.VMEM
    out = pl.pallas_call(
        kernel,
        out_shape=jax.ShapeDtypeStruct((B_pad, out_dim), jnp.float32),
        in_specs=[pl.BlockSpec(memory_space=vmem),       # x2d, whole array resident
                  pl.BlockSpec(memory_space=vmem)],      # packed params, resident
        out_specs=pl.BlockSpec(memory_space=vmem),
        cost_estimate=pl.CostEstimate(
            flops=flops,
            transcendentals=transcendentals,
            bytes_accessed=bytes_accessed,
        ),
        # No grid: total footprint (~100 KiB) is far below every generation's
        # scoped-VMEM default, so a single invocation avoids per-grid-step pipeline
        # overhead and HBM round-trips of the tiny activations.
        # TODO(synk): if B_pad*T grows (x2d + gx scale as B_pad*T*(I+4H)*4 bytes),
        # switch to a time-chunked grid / emit_pipeline before hitting v7x's 64 MiB
        # VMEM; at B_pad >= 16 also add a leading "parallel" batch grid axis
        # (dimension_semantics) so v7x's second TensorCore takes half the batch.
    )(x2d, packed)

    return out[:B]


def make_rnn_forward(params):
    """Builds a jitted forward closed over the static packing metadata."""
    input_size = params["input_size"]
    hidden_size = params["hidden_size"]
    wih_off = params["wih_off"]
    whh_off = params["whh_off"]
    b_off = params["b_off"]
    head_meta = params["head_meta"]

    @jax.jit
    def forward(x_bti, packed):
        # pad_sequence: caller already supplies a padded (B, T, I), batch_first batch.
        # TODO(synk): "x[:, -1, :]" uses the last padded step for short sequences,
        # matching the torch code (no pack_padded_sequence), not last-valid-step.
        return fused_rnn_forward(
            x_bti, packed,
            input_size=input_size, hidden_size=hidden_size,
            wih_off=wih_off, whh_off=whh_off, b_off=b_off, head_meta=head_meta,
        )

    return forward


# ---------------------------------------------------------------------------
# Parameter init (synthetic, torch-shaped) + pure-JAX reference.
# ---------------------------------------------------------------------------
def init_params(key, input_size, hidden_size, linear_sizes):
    ks = jax.random.split(key, 5)
    H, I = hidden_size, input_size
    s = 1.0 / math.sqrt(H)
    # torch shapes: W_ih (4H, I), W_hh (4H, H), b_ih (4H,), b_hh (4H,)
    w_ih = jax.random.uniform(ks[0], (4 * H, I), jnp.float32, -s, s)
    w_hh = jax.random.uniform(ks[1], (4 * H, H), jnp.float32, -s, s)
    b_ih = jax.random.uniform(ks[2], (4 * H,), jnp.float32, -s, s)
    b_hh = jax.random.uniform(ks[3], (4 * H,), jnp.float32, -s, s)

    sizes = [hidden_size] + list(linear_sizes)
    linears = []
    kk = ks[4]
    for i in range(len(sizes) - 1):
        kk, k_w, k_b = jax.random.split(kk, 3)
        fan_in, fan_out = sizes[i], sizes[i + 1]
        bound = 1.0 / math.sqrt(fan_in)
        w = jax.random.uniform(k_w, (fan_out, fan_in), jnp.float32, -bound, bound)
        b = jax.random.uniform(k_b, (fan_out,), jnp.float32, -bound, bound)
        linears.append((w.T, b.reshape(1, -1)))          # pre-transposed for the kernel

    wih_t = w_ih.T                                       # (I, 4H)
    whh_t = w_hh.T                                       # (H, 4H)
    b_lstm = (b_ih + b_hh).reshape(1, -1)                # (1, 4H)

    packed, wih_off, whh_off, b_off, head_meta = _pack_params(
        wih_t, whh_t, b_lstm, linears
    )

    return {
        "input_size": input_size,
        "hidden_size": hidden_size,
        "wih_t": wih_t,
        "whh_t": whh_t,
        "b_lstm": b_lstm,
        "linears": linears,
        "packed": packed,
        "wih_off": wih_off,
        "whh_off": whh_off,
        "b_off": b_off,
        "head_meta": head_meta,
    }


def _reference_forward(x_bti, params):
    """Pure-JAX reference for correctness checking."""
    B, T, I = x_bti.shape
    H = params["hidden_size"]
    h = jnp.zeros((B, H), jnp.float32)
    c = jnp.zeros((B, H), jnp.float32)
    for t in range(T):
        gates = x_bti[:, t, :] @ params["wih_t"] + h @ params["whh_t"] + params["b_lstm"]
        i_g = jax.nn.sigmoid(gates[:, 0 * H:1 * H])
        f_g = jax.nn.sigmoid(gates[:, 1 * H:2 * H])
        g_g = jnp.tanh(gates[:, 2 * H:3 * H])
        o_g = jax.nn.sigmoid(gates[:, 3 * H:4 * H])
        c = f_g * c + i_g * g_g
        h = o_g * jnp.tanh(c)
    for w_t, b_row in params["linears"]:
        h = jnp.maximum(h @ w_t + b_row, 0.0)
    return h


if __name__ == "__main__":
    B, T, INPUT, HIDDEN = 2, 8, 16, 32
    LINEAR_SIZES = [32, 8]                               # last entry = n_classes

    key = jax.random.PRNGKey(0)
    k_x, k_p = jax.random.split(key)
    # Already-padded batch (what pad_sequence would produce), batch_first.
    x = jax.random.normal(k_x, (B, T, INPUT), jnp.float32)
    params = init_params(k_p, INPUT, HIDDEN, LINEAR_SIZES)

    forward = make_rnn_forward(params)
    out = forward(x, params["packed"])
    out = jax.block_until_ready(out)

    ref = _reference_forward(x, params)
    assert out.shape == (B, LINEAR_SIZES[-1]), out.shape
    assert jnp.allclose(out, ref, rtol=1e-5, atol=1e-5), "mismatch vs reference"

    print("KERNEL_OK")
</pallas_src>

<mosaic_0001>
module attributes {stable_mosaic.version = 11 : i64} {
  func.func @kernel(%arg0: memref<64x16xf32, #tpu.memory_space<vmem>>, %arg1: memref<136x128xf32, #tpu.memory_space<vmem>>, %arg2: memref<8x8xf32, #tpu.memory_space<vmem>>) attributes {dimension_semantics = [], scalar_prefetch = 0 : i64, scratch_operands = 0 : i64, tpu.core_type = #tpu.core_type<tc>} {
    %c0 = arith.constant 0 : index
    %c0_0 = arith.constant 0 : index
    %0 = vector.load %arg1[%c0, %c0_0] : memref<136x128xf32, #tpu.memory_space<vmem>>, vector<16x128xf32>
    %c16 = arith.constant 16 : index
    %c0_1 = arith.constant 0 : index
    %1 = vector.load %arg1[%c16, %c0_1] : memref<136x128xf32, #tpu.memory_space<vmem>>, vector<32x128xf32>
    %c48 = arith.constant 48 : index
    %c0_2 = arith.constant 0 : index
    %2 = vector.load %arg1[%c48, %c0_2] : memref<136x128xf32, #tpu.memory_space<vmem>>, vector<1x128xf32>
    %c0_3 = arith.constant 0 : index
    %c0_4 = arith.constant 0 : index
    %3 = vector.load %arg0[%c0_3, %c0_4] : memref<64x16xf32, #tpu.memory_space<vmem>>, vector<64x16xf32>
    %cst = arith.constant dense<0.000000e+00> : vector<64x128xf32>
    %4 = tpu.matmul %3, %0, %cst {dimension_numbers = #tpu.dot_dimension_numbers<[1], [0], [0], [1], [0, 0, 1, 1], [], []>} : vector<64x16xf32>, vector<16x128xf32>, vector<64x128xf32> -> vector<64x128xf32>
    %5 = vector.broadcast %2 : vector<1x128xf32> to vector<64x128xf32>
    %6 = arith.addf %4, %5 : vector<64x128xf32>
    %7 = vector.extract_strided_slice %6 {offsets = [0, 0], sizes = [8, 128], strides = [1, 1]} : vector<64x128xf32> to vector<8x128xf32>
    %8 = arith.negf %7 : vector<8x128xf32>
    %9 = math.exp %8 : vector<8x128xf32>
    %cst_5 = arith.constant 1.000000e+00 : f32
    %10 = vector.broadcast %cst_5 : f32 to vector<8x128xf32>
    %11 = arith.addf %10, %9 : vector<8x128xf32>
    %12 = arith.divf %10, %11 : vector<8x128xf32>
    %13 = math.tanh %7 : vector<8x128xf32>
    %14 = vector.extract_strided_slice %12 {offsets = [0, 0], sizes = [8, 32], strides = [1, 1]} : vector<8x128xf32> to vector<8x32xf32>
    %15 = vector.extract_strided_slice %13 {offsets = [0, 64], sizes = [8, 32], strides = [1, 1]} : vector<8x128xf32> to vector<8x32xf32>
    %16 = arith.mulf %14, %15 : vector<8x32xf32>
    %17 = vector.extract_strided_slice %12 {offsets = [0, 96], sizes = [8, 32], strides = [1, 1]} : vector<8x128xf32> to vector<8x32xf32>
    %18 = math.tanh %16 : vector<8x32xf32>
    %19 = arith.mulf %17, %18 : vector<8x32xf32>
    %20 = vector.extract_strided_slice %6 {offsets = [8, 0], sizes = [8, 128], strides = [1, 1]} : vector<64x128xf32> to vector<8x128xf32>
    %cst_6 = arith.constant dense<0.000000e+00> : vector<8x128xf32>
    %21 = tpu.matmul %19, %1, %cst_6 {dimension_numbers = #tpu.dot_dimension_numbers<[1], [0], [0], [1], [0, 0, 1, 1], [], []>} : vector<8x32xf32>, vector<32x128xf32>, vector<8x128xf32> -> vector<8x128xf32>
    %22 = arith.addf %20, %21 : vector<8x128xf32>
    %23 = arith.negf %22 : vector<8x128xf32>
    %24 = math.exp %23 : vector<8x128xf32>
    %cst_7 = arith.constant 1.000000e+00 : f32
    %25 = vector.broadcast %cst_7 : f32 to vector<8x128xf32>
    %26 = arith.addf %25, %24 : vector<8x128xf32>
    %27 = arith.divf %25, %26 : vector<8x128xf32>
    %28 = math.tanh %22 : vector<8x128xf32>
    %29 = vector.extract_strided_slice %27 {offsets = [0, 32], sizes = [8, 32], strides = [1, 1]} : vector<8x128xf32> to vector<8x32xf32>
    %30 = arith.mulf %29, %16 : vector<8x32xf32>
    %31 = vector.extract_strided_slice %27 {offsets = [0, 0], sizes = [8, 32], strides = [1, 1]} : vector<8x128xf32> to vector<8x32xf32>
    %32 = vector.extract_strided_slice %28 {offsets = [0, 64], sizes = [8, 32], strides = [1, 1]} : vector<8x128xf32> to vector<8x32xf32>
    %33 = arith.mulf %31, %32 : vector<8x32xf32>
    %34 = arith.addf %30, %33 : vector<8x32xf32>
    %35 = vector.extract_strided_slice %27 {offsets = [0, 96], sizes = [8, 32], strides = [1, 1]} : vector<8x128xf32> to vector<8x32xf32>
    %36 = math.tanh %34 : vector<8x32xf32>
    %37 = arith.mulf %35, %36 : vector<8x32xf32>
    %38 = vector.extract_strided_slice %6 {offsets = [16, 0], sizes = [8, 128], strides = [1, 1]} : vector<64x128xf32> to vector<8x128xf32>
    %cst_8 = arith.constant dense<0.000000e+00> : vector<8x128xf32>
    %39 = tpu.matmul %37, %1, %cst_8 {dimension_numbers = #tpu.dot_dimension_numbers<[1], [0], [0], [1], [0, 0, 1, 1], [], []>} : vector<8x32xf32>, vector<32x128xf32>, vector<8x128xf32> -> vector<8x128xf32>
    %40 = arith.addf %38, %39 : vector<8x128xf32>
    %41 = arith.negf %40 : vector<8x128xf32>
    %42 = math.exp %41 : vector<8x128xf32>
    %cst_9 = arith.constant 1.000000e+00 : f32
    %43 = vector.broadcast %cst_9 : f32 to vector<8x128xf32>
    %44 = arith.addf %43, %42 : vector<8x128xf32>
    %45 = arith.divf %43, %44 : vector<8x128xf32>
    %46 = math.tanh %40 : vector<8x128xf32>
    %47 = vector.extract_strided_slice %45 {offsets = [0, 32], sizes = [8, 32], strides = [1, 1]} : vector<8x128xf32> to vector<8x32xf32>
    %48 = arith.mulf %47, %34 : vector<8x32xf32>
    %49 = vector.extract_strided_slice %45 {offsets = [0, 0], sizes = [8, 32], strides = [1, 1]} : vector<8x128xf32> to vector<8x32xf32>
    %50 = vector.extract_strided_slice %46 {offsets = [0, 64], sizes = [8, 32], strides = [1, 1]} : vector<8x128xf32> to vector<8x32xf32>
    %51 = arith.mulf %49, %50 : vector<8x32xf32>
    %52 = arith.addf %48, %51 : vector<8x32xf32>
    %53 = vector.extract_strided_slice %45 {offsets = [0, 96], sizes = [8, 32], strides = [1, 1]} : vector<8x128xf32> to vector<8x32xf32>
    %54 = math.tanh %52 : vector<8x32xf32>
    %55 = arith.mulf %53, %54 : vector<8x32xf32>
    %56 = vector.extract_strided_slice %6 {offsets = [24, 0], sizes = [8, 128], strides = [1, 1]} : vector<64x128xf32> to vector<8x128xf32>
    %cst_10 = arith.constant dense<0.000000e+00> : vector<8x128xf32>
    %57 = tpu.matmul %55, %1, %cst_10 {dimension_numbers = #tpu.dot_dimension_numbers<[1], [0], [0], [1], [0, 0, 1, 1], [], []>} : vector<8x32xf32>, vector<32x128xf32>, vector<8x128xf32> -> vector<8x128xf32>
    %58 = arith.addf %56, %57 : vector<8x128xf32>
    %59 = arith.negf %58 : vector<8x128xf32>
    %60 = math.exp %59 : vector<8x128xf32>
    %cst_11 = arith.constant 1.000000e+00 : f32
    %61 = vector.broadcast %cst_11 : f32 to vector<8x128xf32>
    %62 = arith.addf %61, %60 : vector<8x128xf32>
    %63 = arith.divf %61, %62 : vector<8x128xf32>
    %64 = math.tanh %58 : vector<8x128xf32>
    %65 = vector.extract_strided_slice %63 {offsets = [0, 32], sizes = [8, 32], strides = [1, 1]} : vector<8x128xf32> to vector<8x32xf32>
    %66 = arith.mulf %65, %52 : vector<8x32xf32>
    %67 = vector.extract_strided_slice %63 {offsets = [0, 0], sizes = [8, 32], strides = [1, 1]} : vector<8x128xf32> to vector<8x32xf32>
    %68 = vector.extract_strided_slice %64 {offsets = [0, 64], sizes = [8, 32], strides = [1, 1]} : vector<8x128xf32> to vector<8x32xf32>
    %69 = arith.mulf %67, %68 : vector<8x32xf32>
    %70 = arith.addf %66, %69 : vector<8x32xf32>
    %71 = vector.extract_strided_slice %63 {offsets = [0, 96], sizes = [8, 32], strides = [1, 1]} : vector<8x128xf32> to vector<8x32xf32>
    %72 = math.tanh %70 : vector<8x32xf32>
    %73 = arith.mulf %71, %72 : vector<8x32xf32>
    %74 = vector.extract_strided_slice %6 {offsets = [32, 0], sizes = [8, 128], strides = [1, 1]} : vector<64x128xf32> to vector<8x128xf32>
    %cst_12 = arith.constant dense<0.000000e+00> : vector<8x128xf32>
    %75 = tpu.matmul %73, %1, %cst_12 {dimension_numbers = #tpu.dot_dimension_numbers<[1], [0], [0], [1], [0, 0, 1, 1], [], []>} : vector<8x32xf32>, vector<32x128xf32>, vector<8x128xf32> -> vector<8x128xf32>
    %76 = arith.addf %74, %75 : vector<8x128xf32>
    %77 = arith.negf %76 : vector<8x128xf32>
    %78 = math.exp %77 : vector<8x128xf32>
    %cst_13 = arith.constant 1.000000e+00 : f32
    %79 = vector.broadcast %cst_13 : f32 to vector<8x128xf32>
    %80 = arith.addf %79, %78 : vector<8x128xf32>
    %81 = arith.divf %79, %80 : vector<8x128xf32>
    %82 = math.tanh %76 : vector<8x128xf32>
    %83 = vector.extract_strided_slice %81 {offsets = [0, 32], sizes = [8, 32], strides = [1, 1]} : vector<8x128xf32> to vector<8x32xf32>
    %84 = arith.mulf %83, %70 : vector<8x32xf32>
    %85 = vector.extract_strided_slice %81 {offsets = [0, 0], sizes = [8, 32], strides = [1, 1]} : vector<8x128xf32> to vector<8x32xf32>
    %86 = vector.extract_strided_slice %82 {offsets = [0, 64], sizes = [8, 32], strides = [1, 1]} : vector<8x128xf32> to vector<8x32xf32>
    %87 = arith.mulf %85, %86 : vector<8x32xf32>
    %88 = arith.addf %84, %87 : vector<8x32xf32>
    %89 = vector.extract_strided_slice %81 {offsets = [0, 96], sizes = [8, 32], strides = [1, 1]} : vector<8x128xf32> to vector<8x32xf32>
    %90 = math.tanh %88 : vector<8x32xf32>
    %91 = arith.mulf %89, %90 : vector<8x32xf32>
    %92 = vector.extract_strided_slice %6 {offsets = [40, 0], sizes = [8, 128], strides = [1, 1]} : vector<64x128xf32> to vector<8x128xf32>
    %cst_14 = arith.constant dense<0.000000e+00> : vector<8x128xf32>
    %93 = tpu.matmul %91, %1, %cst_14 {dimension_numbers = #tpu.dot_dimension_numbers<[1], [0], [0], [1], [0, 0, 1, 1], [], []>} : vector<8x32xf32>, vector<32x128xf32>, vector<8x128xf32> -> vector<8x128xf32>
    %94 = arith.addf %92, %93 : vector<8x128xf32>
    %95 = arith.negf %94 : vector<8x128xf32>
    %96 = math.exp %95 : vector<8x128xf32>
    %cst_15 = arith.constant 1.000000e+00 : f32
    %97 = vector.broadcast %cst_15 : f32 to vector<8x128xf32>
    %98 = arith.addf %97, %96 : vector<8x128xf32>
    %99 = arith.divf %97, %98 : vector<8x128xf32>
    %100 = math.tanh %94 : vector<8x128xf32>
    %101 = vector.extract_strided_slice %99 {offsets = [0, 32], sizes = [8, 32], strides = [1, 1]} : vector<8x128xf32> to vector<8x32xf32>
    %102 = arith.mulf %101, %88 : vector<8x32xf32>
    %103 = vector.extract_strided_slice %99 {offsets = [0, 0], sizes = [8, 32], strides = [1, 1]} : vector<8x128xf32> to vector<8x32xf32>
    %104 = vector.extract_strided_slice %100 {offsets = [0, 64], sizes = [8, 32], strides = [1, 1]} : vector<8x128xf32> to vector<8x32xf32>
    %105 = arith.mulf %103, %104 : vector<8x32xf32>
    %106 = arith.addf %102, %105 : vector<8x32xf32>
    %107 = vector.extract_strided_slice %99 {offsets = [0, 96], sizes = [8, 32], strides = [1, 1]} : vector<8x128xf32> to vector<8x32xf32>
    %108 = math.tanh %106 : vector<8x32xf32>
    %109 = arith.mulf %107, %108 : vector<8x32xf32>
    %110 = vector.extract_strided_slice %6 {offsets = [48, 0], sizes = [8, 128], strides = [1, 1]} : vector<64x128xf32> to vector<8x128xf32>
    %cst_16 = arith.constant dense<0.000000e+00> : vector<8x128xf32>
    %111 = tpu.matmul %109, %1, %cst_16 {dimension_numbers = #tpu.dot_dimension_numbers<[1], [0], [0], [1], [0, 0, 1, 1], [], []>} : vector<8x32xf32>, vector<32x128xf32>, vector<8x128xf32> -> vector<8x128xf32>
    %112 = arith.addf %110, %111 : vector<8x128xf32>
    %113 = arith.negf %112 : vector<8x128xf32>
    %114 = math.exp %113 : vector<8x128xf32>
    %cst_17 = arith.constant 1.000000e+00 : f32
    %115 = vector.broadcast %cst_17 : f32 to vector<8x128xf32>
    %116 = arith.addf %115, %114 : vector<8x128xf32>
    %117 = arith.divf %115, %116 : vector<8x128xf32>
    %118 = math.tanh %112 : vector<8x128xf32>
    %119 = vector.extract_strided_slice %117 {offsets = [0, 32], sizes = [8, 32], strides = [1, 1]} : vector<8x128xf32> to vector<8x32xf32>
    %120 = arith.mulf %119, %106 : vector<8x32xf32>
    %121 = vector.extract_strided_slice %117 {offsets = [0, 0], sizes = [8, 32], strides = [1, 1]} : vector<8x128xf32> to vector<8x32xf32>
    %122 = vector.extract_strided_slice %118 {offsets = [0, 64], sizes = [8, 32], strides = [1, 1]} : vector<8x128xf32> to vector<8x32xf32>
    %123 = arith.mulf %121, %122 : vector<8x32xf32>
    %124 = arith.addf %120, %123 : vector<8x32xf32>
    %125 = vector.extract_strided_slice %117 {offsets = [0, 96], sizes = [8, 32], strides = [1, 1]} : vector<8x128xf32> to vector<8x32xf32>
    %126 = math.tanh %124 : vector<8x32xf32>
    %127 = arith.mulf %125, %126 : vector<8x32xf32>
    %128 = vector.extract_strided_slice %6 {offsets = [56, 0], sizes = [8, 128], strides = [1, 1]} : vector<64x128xf32> to vector<8x128xf32>
    %cst_18 = arith.constant dense<0.000000e+00> : vector<8x128xf32>
    %129 = tpu.matmul %127, %1, %cst_18 {dimension_numbers = #tpu.dot_dimension_numbers<[1], [0], [0], [1], [0, 0, 1, 1], [], []>} : vector<8x32xf32>, vector<32x128xf32>, vector<8x128xf32> -> vector<8x128xf32>
    %130 = arith.addf %128, %129 : vector<8x128xf32>
    %131 = arith.negf %130 : vector<8x128xf32>
    %132 = math.exp %131 : vector<8x128xf32>
    %cst_19 = arith.constant 1.000000e+00 : f32
    %133 = vector.broadcast %cst_19 : f32 to vector<8x128xf32>
    %134 = arith.addf %133, %132 : vector<8x128xf32>
    %135 = arith.divf %133, %134 : vector<8x128xf32>
    %136 = math.tanh %130 : vector<8x128xf32>
    %137 = vector.extract_strided_slice %135 {offsets = [0, 32], sizes = [8, 32], strides = [1, 1]} : vector<8x128xf32> to vector<8x32xf32>
    %138 = arith.mulf %137, %124 : vector<8x32xf32>
    %139 = vector.extract_strided_slice %135 {offsets = [0, 0], sizes = [8, 32], strides = [1, 1]} : vector<8x128xf32> to vector<8x32xf32>
    %140 = vector.extract_strided_slice %136 {offsets = [0, 64], sizes = [8, 32], strides = [1, 1]} : vector<8x128xf32> to vector<8x32xf32>
    %141 = arith.mulf %139, %140 : vector<8x32xf32>
    %142 = arith.addf %138, %141 : vector<8x32xf32>
    %143 = vector.extract_strided_slice %135 {offsets = [0, 96], sizes = [8, 32], strides = [1, 1]} : vector<8x128xf32> to vector<8x32xf32>
    %144 = math.tanh %142 : vector<8x32xf32>
    %145 = arith.mulf %143, %144 : vector<8x32xf32>
    %c56 = arith.constant 56 : index
    %c0_20 = arith.constant 0 : index
    %146 = vector.load %arg1[%c56, %c0_20] : memref<136x128xf32, #tpu.memory_space<vmem>>, vector<32x32xf32>
    %c88 = arith.constant 88 : index
    %c0_21 = arith.constant 0 : index
    %147 = vector.load %arg1[%c88, %c0_21] : memref<136x128xf32, #tpu.memory_space<vmem>>, vector<1x32xf32>
    %cst_22 = arith.constant dense<0.000000e+00> : vector<8x32xf32>
    %148 = tpu.matmul %145, %146, %cst_22 {dimension_numbers = #tpu.dot_dimension_numbers<[1], [0], [0], [1], [0, 0, 1, 1], [], []>} : vector<8x32xf32>, vector<32x32xf32>, vector<8x32xf32> -> vector<8x32xf32>
    %149 = vector.broadcast %147 : vector<1x32xf32> to vector<8x32xf32>
    %150 = arith.addf %148, %149 : vector<8x32xf32>
    %cst_23 = arith.constant 0.000000e+00 : f32
    %151 = vector.broadcast %cst_23 : f32 to vector<8x32xf32>
    %152 = arith.maximumf %150, %151 : vector<8x32xf32>
    %c96 = arith.constant 96 : index
    %c0_24 = arith.constant 0 : index
    %153 = vector.load %arg1[%c96, %c0_24] : memref<136x128xf32, #tpu.memory_space<vmem>>, vector<32x8xf32>
    %c128 = arith.constant 128 : index
    %c0_25 = arith.constant 0 : index
    %154 = vector.load %arg1[%c128, %c0_25] : memref<136x128xf32, #tpu.memory_space<vmem>>, vector<1x8xf32>
    %cst_26 = arith.constant dense<0.000000e+00> : vector<8x8xf32>
    %155 = tpu.matmul %152, %153, %cst_26 {dimension_numbers = #tpu.dot_dimension_numbers<[1], [0], [0], [1], [0, 0, 1, 1], [], []>} : vector<8x32xf32>, vector<32x8xf32>, vector<8x8xf32> -> vector<8x8xf32>
    %156 = vector.broadcast %154 : vector<1x8xf32> to vector<8x8xf32>
    %157 = arith.addf %155, %156 : vector<8x8xf32>
    %cst_27 = arith.constant 0.000000e+00 : f32
    %158 = vector.broadcast %cst_27 : f32 to vector<8x8xf32>
    %159 = arith.maximumf %157, %158 : vector<8x8xf32>
    %c0_28 = arith.constant 0 : index
    %c0_29 = arith.constant 0 : index
    %160 = vector.load %arg2[%c0_28, %c0_29] : memref<8x8xf32, #tpu.memory_space<vmem>>, vector<8x8xf32>
    tpu.vector_store %arg2[%c0_28, %c0_29], %159 {strides = array<i32>} : memref<8x8xf32, #tpu.memory_space<vmem>>, vector<8x8xf32>,
    return
  }
}

</mosaic_0001>

<bundles_post_ra>
// kernel: forward.1
= control target key start
LH: loop header
LB: loop body
LE: loop exit
PB: predicated region body
PF: predicated region fallthrough
CT: control target
= control target key end

     0   :  { %vm30_vm0 = vcmask 130048   ;;  %s1324_s19 = smov 64   ;;  %v1325_v16 = vmov 0.0   ;;  %vm1326_vm1 = vmmov 0   ;;  %s1327_s28 = smov 96   ;;  %vm181_vm2 = vcmask 261120   ;;  %s1579_s1 = inlined_call_operand.vmem [shape: f32[136,128], index: 1, kind: input, shape index: {}]   ;;  %s1580_s0 = inlined_call_operand.vmem [shape: f32[64,16], index: 0, kind: input, shape index: {}]   ;;  %s1581_s2 = inlined_call_operand.vmem [shape: f32[8,8], index: 2, kind: output, shape index: {}]  }
   0x1   :  { %v12_v0 = vld [vmem:[%s1579_s1 + $0x8] sm:$0xff]  ;;  %v11_v1 = vld [vmem:[%s1579_s1] sm:$0xff]  ;;  %v1361_v5 = vld [vmem:[%s1579_s1 + $0x30] ss:$0 sm:$0xff]  ;;  %1156 = vmatprep.subr.mxu1 %v1325_v16  ;;  %1164 = vmatprep.mubr.msk.f32.mxu1 %vm1326_vm1, %v1325_v16  ;;  %s1328_s29 = smov 32   ;;  %vm1051_vm3 = vcmask 64512  }
   0x2   :  { %v18_v2 = vld [vmem:[%s1580_s0] sm:$0xff]  ;;  %1140 = vmatprep.subr.mxu0 %v12_v0  ;;  %v19_v3 = vld [vmem:[%s1580_s0 + $0x8] sm:$0xff]  ;;  %v1384_v18 = vld [vmem:[%s1579_s1 + $0x18] sm:$0xff] }
   0x3   :  { %1144 = vmatprep.mubr.msk.f32.mxu0 %vm30_vm0, %v18_v2  ;;  %1141 = vmatpush3.msra.mxu0 %v12_v0  ;;  %v1368_v15 = vld [vmem:[%s1579_s1 + $0x28] sm:$0xff]  ;;  %v1374_v17 = vld [vmem:[%s1579_s1 + $0x20] sm:$0xff]  ;;  %v1393_v19 = vld [vmem:[%s1579_s1 + $0x10] sm:$0xff] }
   0x4   :  { %1142 = vmatprep.subr.mxu0 %v11_v1  ;;  %1157 = vmatpush3.msra.mxu1 %v1368_v15  ;;  %v20_v39 = vld [vmem:[%s1580_s0 + $0x10] sm:$0xff]  ;;  %v21_v40 = vld [vmem:[%s1580_s0 + $0x18] sm:$0xff]  ;;  %v22_v61 = vld [vmem:[%s1580_s0 + $0x20] sm:$0xff] }
   0x5   :  { %1143 = vmatpush3.msra.mxu0 %v11_v1  ;;  %1158 = vmatprep.subr.mxu1 %v1325_v16  ;;  %v23_v62 = vld [vmem:[%s1580_s0 + $0x28] sm:$0xff]  ;;  %v24_v63 = vld [vmem:[%s1580_s0 + $0x30] sm:$0xff]  ;;  %v25_v0 = vld [vmem:[%s1580_s0 + $0x38] sm:$0xff] }
   0x6   :  { %1145 = vmatmul.mubr.msk.f32.vlgmr.msra.gmra.mxu0 %vm30_vm0, %v19_v3  ;;  %1178 = vmatprep.subr.mxu0 %v1325_v16 }
   0x7   :  { %1179 = vmatpush3.msra.mxu0 %v1368_v15  ;;  %1159 = vmatpush3.msra.mxu1 %v1374_v17 }
   0x8   :  { %1180 = vmatprep.subr.mxu0 %v1325_v16  ;;  %1160 = vmatprep.subr.mxu1 %v1325_v16 }
   0x9   :  { %1181 = vmatpush3.msra.mxu0 %v1374_v17  ;;  %1161 = vmatpush3.msra.mxu1 %v1384_v18 }
   0xa   :  { %1182 = vmatprep.subr.mxu0 %v1325_v16  ;;  %1162 = vmatprep.subr.mxu1 %v1325_v16 }
   0xb   :  { %1183 = vmatpush3.msra.mxu0 %v1384_v18  ;;  %1163 = vmatpush3.msra.mxu1 %v1393_v19 }
   0xc   :  { %1184 = vmatprep.subr.mxu0 %v1325_v16  ;;  %1167 = vmatprep.subr.mxu1 %v1325_v16 }
   0xd   :  { %1185 = vmatpush3.msra.mxu0 %v1393_v19  ;;  %1147 = vmatprep.mubr.msk.f32.mxu0 %vm30_vm0, %v20_v39 }
   0xe   :  { %1200 = vmatprep.subr.mxu0 %v1325_v16  ;;  %1148 = vmatmul.mubr.msk.f32.gmra.mxu0 %vm30_vm0, %v21_v40 }
   0xf   :  { %1150 = vmatprep.mubr.msk.f32.mxu0 %vm30_vm0, %v22_v61 }
  0x12   :  { %1151 = vmatmul.mubr.msk.f32.gmra.mxu0 %vm30_vm0, %v23_v62 }
  0x13   :  { %1153 = vmatprep.mubr.msk.f32.mxu0 %vm30_vm0, %v24_v63 }
  0x16   :  { %1154 = vmatmul.mubr.msk.f32.gmra.mxu0 %vm30_vm0, %v25_v0 }
  0x17   :  { %1186 = vmatprep.mubr.msk.f32.mxu0 %vm1326_vm1, %v1325_v16 }
  0xc6   :  { %v1146_v4 = vpop.f32.mrf.mxu0 }
  0xc7   :  { %v127_v24 = vadd.f32 %v1146_v4, %v1361_v5 }
  0xc8   :  { %v121_v6 = vpop.f32.mrf.mxu0 }
  0xc9   :  { %v122_v7 = vadd.f32 %v1361_v5, %v121_v6 }
  0xcb   :  { %1260 = vtanh.f32 %v122_v7  ;;  %v1066_v9 = vmul.f32 -1.442695, %v122_v7 }
  0xcd   :  { %1262 = vpow2.f32 %v1066_v9 }
  0xce   :  { %v1149_v45 = vpop.f32.mrf.mxu0 }
  0xd0   :  { %v131_v46 = vpop.f32.mrf.mxu0 }
  0xd1   :  { %v132_v47 = vadd.f32 %v1361_v5, %v131_v46 }
  0xd2   :  { %v1476_v6 = vpop.f32.mrf.mxu0 }
  0xd4   :  { %v141_v7 = vpop.f32.mrf.mxu0 }
  0xd8   :  { %v1261_v8 = vpop.eup %1260 }
  0xd9   :  { %168 = vrot.lane.b32.xlu0 %v1261_v8, %s1324_s19  ;;  %v1478_v8 = vpop.f32.mrf.mxu0 }
  0xda   :  { %v1263_v10 = vpop.eup %1262 }
  0xdb   :  { %v163_v11 = vadd.f32 1.0, %v1263_v10  ;;  %v1480_v9 = vpop.f32.mrf.mxu0  ;;  %v137_v10 = vadd.f32 %v1149_v45, %v1361_v5 }
  0xdd   :  { %1264 = vrcp.f32 %v163_v11 }
  0xea   :  { %v1265_v12 = vpop.eup %1264 }
 0x14b   :  { %v169_v13 = vpop.permute.xlu0 %168 }
 0x14c   :  { %v171_v14 = vmul.f32 %v1265_v12, %v169_v13 }
 0x14e   :  { %1266 = vtanh.f32 %v171_v14 }
 0x15b   :  { %v1267_v20 = vpop.eup %1266 }
 0x15c   :  { %174 = vrot.lane.b32.xlu0 %v1267_v20, %s1327_s28 }
 0x160   :  { %263 = vrot.lane.b32.xlu0 %v171_v14, %s1328_s29 }
 0x1ce   :  { %v175_v21 = vpop.permute.xlu0 %174 }
 0x1cf   :  { %v177_v22 = vmul.f32 %v1265_v12, %v175_v21 }
 0x1d1   :  { %179 = vrot.lane.b32.xlu1 %v177_v22, %s1328_s29 }
 0x1d2   :  { %v264_v35 = vpop.permute.xlu0 %263 }
 0x243   :  { %v180_v23 = vpop.permute.xlu1 %179 }
 0x244   :  { %1165 = vmatmul.mubr.msk.f32.vlgmr.msra.gmra.mxu1 %vm181_vm2, %v180_v23 }
 0x245   :  { %1168 = vmatpush3.msra.mxu1 %v1368_v15  ;;  %1175 = vmatprep.mubr.msk.f32.mxu1 %vm1326_vm1, %v1325_v16 }
 0x246   :  { %1169 = vmatprep.subr.mxu1 %v1325_v16 }
 0x247   :  { %1170 = vmatpush3.msra.mxu1 %v1374_v17 }
 0x248   :  { %1171 = vmatprep.subr.mxu1 %v1325_v16 }
 0x249   :  { %1172 = vmatpush3.msra.mxu1 %v1384_v18 }
 0x24a   :  { %1173 = vmatprep.subr.mxu1 %v1325_v16 }
 0x24b   :  { %1174 = vmatpush3.msra.mxu1 %v1393_v19 }
 0x24c   :  { %1189 = vmatprep.subr.mxu1 %v1325_v16 }
 0x304   :  { %v250_v25 = vpop.f32.mrf.mxu1 }
 0x305   :  { %v254_v26 = vadd.f32 %v250_v25, %v127_v24 }
 0x306   :  { %v1166_v27 = vpop.f32.mrf.mxu1 }
 0x307   :  { %1268 = vtanh.f32 %v254_v26  ;;  %v1068_v29 = vmul.f32 -1.442695, %v254_v26 }
 0x309   :  { %1270 = vpow2.f32 %v1068_v29 }
 0x314   :  { %v1269_v28 = vpop.eup %1268 }
 0x315   :  { %268 = vrot.lane.b32.xlu1 %v1269_v28, %s1324_s19 }
 0x316   :  { %v1271_v30 = vpop.eup %1270 }
 0x317   :  { %v258_v31 = vadd.f32 1.0, %v1271_v30 }
 0x319   :  { %1272 = vrcp.f32 %v258_v31 }
 0x326   :  { %v1273_v32 = vpop.eup %1272 }
 0x327   :  { %v266_v36 = vmul.f32 %v1273_v32, %v264_v35 }
 0x387   :  { %v269_v33 = vpop.permute.xlu1 %268 }
 0x388   :  { %v271_v34 = vmul.f32 %v1273_v32, %v269_v33  ;;  %v142_v33 = vadd.f32 %v1361_v5, %v141_v7 }
 0x38a   :  { %273 = vrot.lane.b32.xlu1 %v271_v34, %s1328_s29 }
 0x3fc   :  { %v274_v37 = vpop.permute.xlu1 %273 }
 0x3fd   :  { %v276_v38 = vadd.f32 %v274_v37, %v266_v36 }
 0x3ff   :  { %1274 = vtanh.f32 %v276_v38 }
 0x40c   :  { %v1275_v41 = vpop.eup %1274 }
 0x40d   :  { %279 = vrot.lane.b32.xlu0 %v1275_v41, %s1324_s19 }
 0x47f   :  { %v280_v42 = vpop.permute.xlu0 %279 }
 0x480   :  { %v282_v43 = vmul.f32 %v1273_v32, %v280_v42 }
 0x482   :  { %284 = vrot.lane.b32.xlu1 %v282_v43, %s1328_s29 }
 0x4f4   :  { %v285_v44 = vpop.permute.xlu1 %284 }
 0x4f5   :  { %1176 = vmatmul.mubr.msk.f32.vlgmr.msra.gmra.mxu1 %vm181_vm2, %v285_v44 }
 0x4f6   :  { %1190 = vmatpush3.msra.mxu1 %v1368_v15  ;;  %1197 = vmatprep.mubr.msk.f32.mxu1 %vm1326_vm1, %v1325_v16 }
 0x4f7   :  { %1191 = vmatprep.subr.mxu1 %v1325_v16 }
 0x4f8   :  { %1192 = vmatpush3.msra.mxu1 %v1374_v17 }
 0x4f9   :  { %1193 = vmatprep.subr.mxu1 %v1325_v16 }
 0x4fa   :  { %1194 = vmatpush3.msra.mxu1 %v1384_v18 }
 0x4fb   :  { %1195 = vmatprep.subr.mxu1 %v1325_v16 }
 0x4fc   :  { %1196 = vmatpush3.msra.mxu1 %v1393_v19 }
 0x4fd   :  { %1211 = vmatprep.subr.mxu1 %v1325_v16 }
 0x5b5   :  { %v354_v48 = vpop.f32.mrf.mxu1 }
 0x5b6   :  { %v358_v49 = vadd.f32 %v354_v48, %v132_v47 }
 0x5b7   :  { %v1177_v50 = vpop.f32.mrf.mxu1 }
 0x5b8   :  { %1276 = vtanh.f32 %v358_v49  ;;  %v1070_v52 = vmul.f32 -1.442695, %v358_v49 }
 0x5ba   :  { %1278 = vpow2.f32 %v1070_v52 }
 0x5c5   :  { %v1277_v51 = vpop.eup %1276 }
 0x5c6   :  { %368 = vrot.lane.b32.xlu0 %v1277_v51, %s1324_s19 }
 0x5c7   :  { %v1279_v53 = vpop.eup %1278 }
 0x5c8   :  { %v362_v54 = vadd.f32 1.0, %v1279_v53 }
 0x5ca   :  { %1280 = vrcp.f32 %v362_v54 }
 0x5d7   :  { %v1281_v55 = vpop.eup %1280 }
 0x5d8   :  { %v366_v58 = vmul.f32 %v1281_v55, %v276_v38 }
 0x638   :  { %v369_v56 = vpop.permute.xlu0 %368 }
 0x639   :  { %v371_v57 = vmul.f32 %v1281_v55, %v369_v56 }
 0x63b   :  { %373 = vrot.lane.b32.xlu1 %v371_v57, %s1328_s29 }
 0x6ad   :  { %v374_v59 = vpop.permute.xlu1 %373 }
 0x6ae   :  { %v376_v60 = vadd.f32 %v374_v59, %v366_v58 }
 0x6b0   :  { %1282 = vtanh.f32 %v376_v60 }
 0x6bd   :  { %v1283_v1 = vpop.eup %1282 }
 0x6be   :  { %379 = vrot.lane.b32.xlu0 %v1283_v1, %s1324_s19  ;;  %v152_v1 = vadd.f32 %v1361_v5, %v1480_v9 }
 0x730   :  { %v380_v2 = vpop.permute.xlu0 %379 }
 0x731   :  { %v382_v3 = vmul.f32 %v1281_v55, %v380_v2 }
 0x733   :  { %384 = vrot.lane.b32.xlu1 %v382_v3, %s1328_s29 }
 0x7a5   :  { %v385_v4 = vpop.permute.xlu1 %384 }
 0x7a6   :  { %1187 = vmatmul.mubr.msk.f32.vlgmr.msra.gmra.mxu0 %vm181_vm2, %v385_v4 }
 0x7a7   :  { %1201 = vmatpush3.msra.mxu0 %v1368_v15  ;;  %1208 = vmatprep.mubr.msk.f32.mxu0 %vm1326_vm1, %v1325_v16 }
 0x7a8   :  { %1202 = vmatprep.subr.mxu0 %v1325_v16 }
 0x7a9   :  { %1203 = vmatpush3.msra.mxu0 %v1374_v17 }
 0x7aa   :  { %1204 = vmatprep.subr.mxu0 %v1325_v16 }
 0x7ab   :  { %1205 = vmatpush3.msra.mxu0 %v1384_v18 }
 0x7ac   :  { %1206 = vmatprep.subr.mxu0 %v1325_v16 }
 0x7ad   :  { %1207 = vmatpush3.msra.mxu0 %v1393_v19 }
 0x7ae   :  { %1222 = vmatprep.subr.mxu0 %v1325_v16 }
 0x866   :  { %v454_v11 = vpop.f32.mrf.mxu0 }
 0x867   :  { %v458_v12 = vadd.f32 %v454_v11, %v137_v10 }
 0x868   :  { %v1188_v13 = vpop.f32.mrf.mxu0 }
 0x869   :  { %1284 = vtanh.f32 %v458_v12  ;;  %v1072_v20 = vmul.f32 -1.442695, %v458_v12 }
 0x86b   :  { %1286 = vpow2.f32 %v1072_v20 }
 0x876   :  { %v1285_v14 = vpop.eup %1284 }
 0x877   :  { %468 = vrot.lane.b32.xlu0 %v1285_v14, %s1324_s19 }
 0x878   :  { %v1287_v21 = vpop.eup %1286 }
 0x879   :  { %v462_v22 = vadd.f32 1.0, %v1287_v21 }
 0x87b   :  { %1288 = vrcp.f32 %v462_v22 }
 0x888   :  { %v1289_v23 = vpop.eup %1288 }
 0x889   :  { %v466_v26 = vmul.f32 %v1289_v23, %v376_v60 }
 0x8e9   :  { %v469_v24 = vpop.permute.xlu0 %468 }
 0x8ea   :  { %v471_v25 = vmul.f32 %v1289_v23, %v469_v24 }
 0x8ec   :  { %473 = vrot.lane.b32.xlu1 %v471_v25, %s1328_s29 }
 0x95e   :  { %v474_v27 = vpop.permute.xlu1 %473 }
 0x95f   :  { %v476_v28 = vadd.f32 %v474_v27, %v466_v26  ;;  %v157_v26 = vadd.f32 %v1478_v8, %v1361_v5  ;;  %v886_v8 = vld [vmem:[%s1579_s1 + $0x50] sm:$0xff] }
 0x961   :  { %1290 = vtanh.f32 %v476_v28 }
 0x96e   :  { %v1291_v29 = vpop.eup %1290 }
 0x96f   :  { %479 = vrot.lane.b32.xlu0 %v1291_v29, %s1324_s19 }
 0x9e1   :  { %v480_v30 = vpop.permute.xlu0 %479 }
 0x9e2   :  { %v482_v31 = vmul.f32 %v1289_v23, %v480_v30 }
 0x9e4   :  { %484 = vrot.lane.b32.xlu1 %v482_v31, %s1328_s29 }
 0xa56   :  { %v485_v32 = vpop.permute.xlu1 %484 }
 0xa57   :  { %1198 = vmatmul.mubr.msk.f32.vlgmr.msra.gmra.mxu1 %vm181_vm2, %v485_v32 }
 0xa58   :  { %1212 = vmatpush3.msra.mxu1 %v1368_v15  ;;  %1219 = vmatprep.mubr.msk.f32.mxu1 %vm1326_vm1, %v1325_v16 }
 0xa59   :  { %1213 = vmatprep.subr.mxu1 %v1325_v16 }
 0xa5a   :  { %1214 = vmatpush3.msra.mxu1 %v1374_v17 }
 0xa5b   :  { %1215 = vmatprep.subr.mxu1 %v1325_v16 }
 0xa5c   :  { %1216 = vmatpush3.msra.mxu1 %v1384_v18 }
 0xa5d   :  { %1217 = vmatprep.subr.mxu1 %v1325_v16 }
 0xa5e   :  { %1218 = vmatpush3.msra.mxu1 %v1393_v19 }
 0xa5f   :  { %1233 = vmatprep.subr.mxu1 %v1325_v16 }
 0xb17   :  { %v554_v34 = vpop.f32.mrf.mxu1 }
 0xb18   :  { %v558_v35 = vadd.f32 %v554_v34, %v142_v33 }
 0xb19   :  { %v1199_v36 = vpop.f32.mrf.mxu1 }
 0xb1a   :  { %1292 = vtanh.f32 %v558_v35  ;;  %v1074_v38 = vmul.f32 -1.442695, %v558_v35 }
 0xb1c   :  { %1294 = vpow2.f32 %v1074_v38 }
 0xb27   :  { %v1293_v37 = vpop.eup %1292 }
 0xb28   :  { %568 = vrot.lane.b32.xlu0 %v1293_v37, %s1324_s19 }
 0xb29   :  { %v1295_v39 = vpop.eup %1294 }
 0xb2a   :  { %v562_v40 = vadd.f32 1.0, %v1295_v39  ;;  %v885_v39 = vld [vmem:[%s1579_s1 + $0x48] sm:$0xff] }
 0xb2c   :  { %1296 = vrcp.f32 %v562_v40  ;;  %v884_v40 = vld [vmem:[%s1579_s1 + $0x40] sm:$0xff] }
 0xb39   :  { %v1297_v41 = vpop.eup %1296 }
 0xb3a   :  { %v566_v44 = vmul.f32 %v1297_v41, %v476_v28 }
 0xb9a   :  { %v569_v42 = vpop.permute.xlu0 %568 }
 0xb9b   :  { %v571_v43 = vmul.f32 %v1297_v41, %v569_v42 }
 0xb9d   :  { %573 = vrot.lane.b32.xlu1 %v571_v43, %s1328_s29  ;;  %v971_v43 = vld [vmem:[%s1579_s1 + $0x78] sm:$0xff] }
 0xc0f   :  { %v574_v45 = vpop.permute.xlu1 %573 }
 0xc10   :  { %v576_v46 = vadd.f32 %v574_v45, %v566_v44 }
 0xc12   :  { %1298 = vtanh.f32 %v576_v46 }
 0xc1f   :  { %v1299_v47 = vpop.eup %1298 }
 0xc20   :  { %579 = vrot.lane.b32.xlu0 %v1299_v47, %s1324_s19  ;;  %v970_v47 = vld [vmem:[%s1579_s1 + $0x70] sm:$0xff] }
 0xc92   :  { %v580_v48 = vpop.permute.xlu0 %579 }
 0xc93   :  { %v582_v49 = vmul.f32 %v1297_v41, %v580_v48  ;;  %v883_v41 = vld [vmem:[%s1579_s1 + $0x38] sm:$0xff]  ;;  %v969_v48 = vld [vmem:[%s1579_s1 + $0x68] sm:$0xff] }
 0xc95   :  { %584 = vrot.lane.b32.xlu1 %v582_v49, %s1328_s29  ;;  %v968_v49 = vld [vmem:[%s1579_s1 + $0x60] sm:$0xff] }
 0xd07   :  { %v585_v50 = vpop.permute.xlu1 %584 }
 0xd08   :  { %1209 = vmatmul.mubr.msk.f32.vlgmr.msra.gmra.mxu0 %vm181_vm2, %v585_v50  ;;  %v1081_v50 = vld [vmem:[%s1579_s1 + $0x58] ss:$0 sm:$0xff] }
 0xd09   :  { %1223 = vmatpush3.msra.mxu0 %v1368_v15  ;;  %1230 = vmatprep.mubr.msk.f32.mxu0 %vm1326_vm1, %v1325_v16  ;;  %v147_v15 = vadd.f32 %v1476_v6, %v1361_v5 }
 0xd0a   :  { %1224 = vmatprep.subr.mxu0 %v1325_v16 }
 0xd0b   :  { %1225 = vmatpush3.msra.mxu0 %v1374_v17 }
 0xd0c   :  { %1226 = vmatprep.subr.mxu0 %v1325_v16 }
 0xd0d   :  { %1227 = vmatpush3.msra.mxu0 %v1384_v18 }
 0xd0e   :  { %1228 = vmatprep.subr.mxu0 %v1325_v16 }
 0xd0f   :  { %1229 = vmatpush3.msra.mxu0 %v1393_v19 }
 0xd10   :  { %1244 = vmatprep.subr.mxu0 %v1325_v16 }
 0xdc8   :  { %v654_v51 = vpop.f32.mrf.mxu0 }
 0xdc9   :  { %v658_v52 = vadd.f32 %v654_v51, %v147_v15 }
 0xdca   :  { %v1210_v53 = vpop.f32.mrf.mxu0 }
 0xdcb   :  { %1300 = vtanh.f32 %v658_v52  ;;  %v1076_v17 = vmul.f32 -1.442695, %v658_v52 }
 0xdcd   :  { %1302 = vpow2.f32 %v1076_v17 }
 0xdd8   :  { %v1301_v54 = vpop.eup %1300 }
 0xdd9   :  { %668 = vrot.lane.b32.xlu0 %v1301_v54, %s1324_s19  ;;  %v1083_v54 = vld [vmem:[%s1579_s1 + $0x80] ss:$0 sm:$0xff] }
 0xdda   :  { %v1303_v55 = vpop.eup %1302 }
 0xddb   :  { %v662_v18 = vadd.f32 1.0, %v1303_v55 }
 0xddd   :  { %1304 = vrcp.f32 %v662_v18 }
 0xdea   :  { %v1305_v56 = vpop.eup %1304 }
 0xdeb   :  { %v666_v58 = vmul.f32 %v1305_v56, %v576_v46 }
 0xe4b   :  { %v669_v57 = vpop.permute.xlu0 %668 }
 0xe4c   :  { %v671_v19 = vmul.f32 %v1305_v56, %v669_v57 }
 0xe4e   :  { %673 = vrot.lane.b32.xlu1 %v671_v19, %s1328_s29 }
 0xec0   :  { %v674_v59 = vpop.permute.xlu1 %673 }
 0xec1   :  { %v676_v60 = vadd.f32 %v674_v59, %v666_v58 }
 0xec3   :  { %1306 = vtanh.f32 %v676_v60 }
 0xed0   :  { %v1307_v61 = vpop.eup %1306 }
 0xed1   :  { %679 = vrot.lane.b32.xlu0 %v1307_v61, %s1324_s19 }
 0xf43   :  { %v680_v62 = vpop.permute.xlu0 %679 }
 0xf44   :  { %v682_v63 = vmul.f32 %v1305_v56, %v680_v62 }
 0xf46   :  { %684 = vrot.lane.b32.xlu1 %v682_v63, %s1328_s29 }
 0xfb8   :  { %v685_v0 = vpop.permute.xlu1 %684 }
 0xfb9   :  { %1220 = vmatmul.mubr.msk.f32.vlgmr.msra.gmra.mxu1 %vm181_vm2, %v685_v0 }
 0xfba   :  { %1241 = vmatprep.mubr.msk.f32.mxu1 %vm1326_vm1, %v1325_v16  ;;  %1234 = vmatpush3.msra.mxu1 %v886_v8 }
 0xfbb   :  { %1235 = vmatprep.subr.mxu1 %v1325_v16 }
 0xfbc   :  { %1236 = vmatpush3.msra.mxu1 %v885_v39 }
 0xfbd   :  { %1237 = vmatprep.subr.mxu1 %v1325_v16 }
 0xfbe   :  { %1238 = vmatpush3.msra.mxu1 %v884_v40 }
 0xfbf   :  { %1239 = vmatprep.subr.mxu1 %v1325_v16 }
 0xfc0   :  { %1240 = vmatpush3.msra.mxu1 %v883_v41 }
0x1079   :  { %v754_v2 = vpop.f32.mrf.mxu1 }
0x107a   :  { %v758_v3 = vadd.f32 %v754_v2, %v152_v1 }
0x107b   :  { %v1221_v4 = vpop.f32.mrf.mxu1 }
0x107c   :  { %1308 = vtanh.f32 %v758_v3  ;;  %v1078_v7 = vmul.f32 -1.442695, %v758_v3 }
0x107e   :  { %1310 = vpow2.f32 %v1078_v7 }
0x1089   :  { %v1309_v6 = vpop.eup %1308 }
0x108a   :  { %768 = vrot.lane.b32.xlu0 %v1309_v6, %s1324_s19 }
0x108b   :  { %v1311_v10 = vpop.eup %1310 }
0x108c   :  { %v762_v11 = vadd.f32 1.0, %v1311_v10 }
0x108e   :  { %1312 = vrcp.f32 %v762_v11 }
0x109b   :  { %v1313_v12 = vpop.eup %1312 }
0x109c   :  { %v766_v20 = vmul.f32 %v1313_v12, %v676_v60 }
0x10fc   :  { %v769_v13 = vpop.permute.xlu0 %768 }
0x10fd   :  { %v771_v14 = vmul.f32 %v1313_v12, %v769_v13 }
0x10ff   :  { %773 = vrot.lane.b32.xlu1 %v771_v14, %s1328_s29 }
0x1171   :  { %v774_v21 = vpop.permute.xlu1 %773 }
0x1172   :  { %v776_v9 = vadd.f32 %v774_v21, %v766_v20 }
0x1174   :  { %1314 = vtanh.f32 %v776_v9 }
0x1181   :  { %v1315_v22 = vpop.eup %1314 }
0x1182   :  { %779 = vrot.lane.b32.xlu0 %v1315_v22, %s1324_s19 }
0x11f4   :  { %v780_v23 = vpop.permute.xlu0 %779 }
0x11f5   :  { %v782_v24 = vmul.f32 %v1313_v12, %v780_v23 }
0x11f7   :  { %784 = vrot.lane.b32.xlu1 %v782_v24, %s1328_s29 }
0x1269   :  { %v785_v25 = vpop.permute.xlu1 %784 }
0x126a   :  { %1231 = vmatmul.mubr.msk.f32.vlgmr.msra.gmra.mxu0 %vm181_vm2, %v785_v25 }
0x126b   :  { %1252 = vmatprep.mubr.msk.f32.mxu0 %vm1326_vm1, %v1325_v16  ;;  %1245 = vmatpush3.msra.mxu0 %v971_v43 }
0x126c   :  { %1246 = vmatprep.subr.mxu0 %v1325_v16 }
0x126d   :  { %1247 = vmatpush3.msra.mxu0 %v970_v47 }
0x126e   :  { %1248 = vmatprep.subr.mxu0 %v1325_v16 }
0x126f   :  { %1249 = vmatpush3.msra.mxu0 %v969_v48 }
0x1270   :  { %1250 = vmatprep.subr.mxu0 %v1325_v16 }
0x1271   :  { %1251 = vmatpush3.msra.mxu0 %v968_v49 }
0x132a   :  { %v854_v27 = vpop.f32.mrf.mxu0 }
0x132b   :  { %v858_v28 = vadd.f32 %v854_v27, %v157_v26 }
0x132c   :  { %v1232_v29 = vpop.f32.mrf.mxu0 }
0x132d   :  { %1316 = vtanh.f32 %v858_v28  ;;  %v1080_v31 = vmul.f32 -1.442695, %v858_v28 }
0x132f   :  { %1318 = vpow2.f32 %v1080_v31 }
0x133a   :  { %v1317_v30 = vpop.eup %1316 }
0x133b   :  { %868 = vrot.lane.b32.xlu0 %v1317_v30, %s1324_s19 }
0x133c   :  { %v1319_v32 = vpop.eup %1318 }
0x133d   :  { %v862_v33 = vadd.f32 1.0, %v1319_v32 }
0x133f   :  { %1320 = vrcp.f32 %v862_v33 }
0x134c   :  { %v1321_v34 = vpop.eup %1320 }
0x134d   :  { %v866_v37 = vmul.f32 %v1321_v34, %v776_v9 }
0x13ad   :  { %v869_v35 = vpop.permute.xlu0 %868 }
0x13ae   :  { %v871_v36 = vmul.f32 %v1321_v34, %v869_v35 }
0x13b0   :  { %873 = vrot.lane.b32.xlu1 %v871_v36, %s1328_s29 }
0x1422   :  { %v874_v38 = vpop.permute.xlu1 %873 }
0x1423   :  { %v876_v5 = vadd.f32 %v874_v38, %v866_v37 }
0x1425   :  { %1322 = vtanh.f32 %v876_v5 }
0x1432   :  { %v1323_v42 = vpop.eup %1322 }
0x1433   :  { %879 = vrot.lane.b32.xlu0 %v1323_v42, %s1324_s19 }
0x14a5   :  { %v880_v44 = vpop.permute.xlu0 %879 }
0x14a6   :  { %v882_v45 = vmul.f32 %v1321_v34, %v880_v44 }
0x14a8   :  { %893 = vrot.lane.b32.xlu1 %v882_v45, %s1328_s29 }
0x151a   :  { %v894_v46 = vpop.permute.xlu1 %893 }
0x151b   :  { %1242 = vmatmul.mubr.msk.f32.vlgmr.msra.gmra.mxu1 %vm181_vm2, %v894_v46 }
0x15db   :  { %v963_v15 = vpop.f32.mrf.mxu1 }
0x15dc   :  { %v964_v51 = vadd.f32 %v1081_v50, %v963_v15 }
0x15dd   :  { %v1243_v52 = vpop.f32.mrf.mxu1 }
0x15de   :  { %v967_v53 = vmax.f32 %v964_v51, 0.0 }
0x15e0   :  { %1253 = vmatmul.mubr.msk.f32.vlgmr.msra.gmra.mxu0 %vm181_vm2, %v967_v53 }
0x16a0   :  { %v1046_v16 = vpop.f32.mrf.mxu0 }
0x16a1   :  { %v1047_v17 = vadd.f32 %v1083_v54, %v1046_v16 }
0x16a2   :  { %v1254_v55 = vpop.f32.mrf.mxu0 }
0x16a3   :  { %v1050_v18 = vmax.f32 %v1047_v17, 0.0 }
0x16a5   :  { %1052 = vst.msk [vmem:[%s1581_s2] sm:$0xff] %vm1051_vm3, %v1050_v18 }

</bundles_post_ra>
